<compile_context>
chip_gen: v5e
topology: v5e:2x2
jax: 0.10.0
libtpu: 0.0.40
codegen_flags: <defaults>
</compile_context>

<pallas_src>
import functools

import numpy as np
import jax
import jax.numpy as jnp
from jax.experimental import pallas as pl
from jax.experimental.pallas import tpu as pltpu


# ---------------------------------------------------------------------------
# Tiled linear kernels (bf16 inputs, fp32 accumulate)
# ---------------------------------------------------------------------------
def _linear_kernel(x_ref, w_ref, o_ref, acc_ref):
    @pl.when(pl.program_id(2) == 0)
    def _init():
        acc_ref[...] = jnp.zeros_like(acc_ref)

    acc_ref[...] += jnp.dot(
        x_ref[...], w_ref[...], preferred_element_type=jnp.float32
    )

    @pl.when(pl.program_id(2) == pl.num_programs(2) - 1)
    def _fini():
        o_ref[...] = acc_ref[...].astype(o_ref.dtype)


def _linear_bias_kernel(x_ref, w_ref, b_ref, o_ref, acc_ref):
    @pl.when(pl.program_id(2) == 0)
    def _init():
        acc_ref[...] = jnp.zeros_like(acc_ref)

    acc_ref[...] += jnp.dot(
        x_ref[...], w_ref[...], preferred_element_type=jnp.float32
    )

    @pl.when(pl.program_id(2) == pl.num_programs(2) - 1)
    def _fini():
        o_ref[...] = (acc_ref[...] + b_ref[...].astype(jnp.float32)).astype(o_ref.dtype)


def _divisor_tile(dim, candidates):
    """Largest candidate that divides dim, else None."""
    for c in candidates:
        if dim % c == 0:
            return c
    return None


def pallas_linear(x, w, b=None, out_dtype=None):
    """x: (M, K) bf16, w: (K, N) bf16, b: (1, N) f32 or None -> (M, N) out_dtype."""
    M, K = x.shape
    N = w.shape[1]
    out_dtype = out_dtype if out_dtype is not None else x.dtype

    # Bigger tiles than strictly needed to fill the MXU: these ViT-sized GEMMs
    # are HBM-bound, so larger tm/tn cut weight/activation re-fetch and larger
    # tk amortizes the ~0.35us/step grid overhead. Worst-case double-buffered
    # working set stays ~7 MiB, far under the 32 MiB scoped VMEM limit.
    tm = _divisor_tile(M, (512, 256, 128))
    pad_m = 0
    if tm is None:
        if M <= 512:
            tm = M                      # small / ragged M: single row tile
        else:
            tm = 256                    # pad M up to a tile multiple
            pad_m = (-M) % tm
            x = jnp.pad(x, ((0, pad_m), (0, 0)))
    Mp = M + pad_m

    tn = _divisor_tile(N, (512, 256, 128)) or N
    tk = _divisor_tile(K, (1024, 512, 256, 128)) or K
    grid = (Mp // tm, N // tn, K // tk)

    x_spec = pl.BlockSpec((tm, tk), lambda i, j, k: (i, k))
    w_spec = pl.BlockSpec((tk, tn), lambda i, j, k: (k, j))
    o_spec = pl.BlockSpec((tm, tn), lambda i, j, k: (i, j))
    params = pltpu.CompilerParams(
        dimension_semantics=("parallel", "parallel", "arbitrary"),
        vmem_limit_bytes=32 * 1024 * 1024,
    )

    if b is None:
        out = pl.pallas_call(
            _linear_kernel,
            out_shape=jax.ShapeDtypeStruct((Mp, N), out_dtype),
            grid=grid,
            in_specs=[x_spec, w_spec],
            out_specs=o_spec,
            scratch_shapes=[pltpu.VMEM((tm, tn), jnp.float32)],
            compiler_params=params,
        )(x, w)
    else:
        b_spec = pl.BlockSpec((1, tn), lambda i, j, k: (0, j))
        out = pl.pallas_call(
            _linear_bias_kernel,
            out_shape=jax.ShapeDtypeStruct((Mp, N), out_dtype),
            grid=grid,
            in_specs=[x_spec, w_spec, b_spec],
            out_specs=o_spec,
            scratch_shapes=[pltpu.VMEM((tm, tn), jnp.float32)],
            compiler_params=params,
        )(x, w, b)

    if pad_m:
        out = out[:M]
    return out


# ---------------------------------------------------------------------------
# Flash-style multi-head attention.
#   grid = (B, q_tiles, kv_tiles);  online softmax over the kv axis.
#   Inputs are separate q / k / v activations of shape (B, N, C), C = H*D.
# ---------------------------------------------------------------------------
def _flash_attn_kernel(q_ref, k_ref, v_ref, o_ref, m_ref, l_ref, acc_ref,
                       *, num_heads, head_dim, scale):
    ki = pl.program_id(2)

    @pl.when(ki == 0)
    def _init():
        m_ref[...] = jnp.full_like(m_ref, -jnp.inf)
        l_ref[...] = jnp.zeros_like(l_ref)
        acc_ref[...] = jnp.zeros_like(acc_ref)

    H, D = num_heads, head_dim
    tq = q_ref.shape[1]
    tkv = k_ref.shape[1]

    # Head-batched layout (H, rows, D): one batched MXU matmul per step
    # instead of H narrow D-wide lane slices.
    qh = q_ref[0].reshape(tq, H, D).transpose(1, 0, 2)    # (H, tq,  D) bf16
    kh = k_ref[0].reshape(tkv, H, D).transpose(1, 0, 2)   # (H, tkv, D) bf16
    vh = v_ref[0].reshape(tkv, H, D).transpose(1, 0, 2)   # (H, tkv, D) bf16

    # Scores in fp32; the softmax scale is applied to the fp32 scores (keeps
    # mantissa bits vs. folding into bf16 q; the extra VPU mul hides under MXU).
    s = jnp.einsum("hqd,hkd->hqk", qh, kh,
                   preferred_element_type=jnp.float32) * scale   # (H, tq, tkv)

    m_prev = m_ref[...]                                          # (H, tq, 1)
    m_new = jnp.maximum(m_prev, jnp.max(s, axis=-1, keepdims=True))
    alpha = jnp.exp(m_prev - m_new)                              # (H, tq, 1)
    p = jnp.exp(s - m_new)                                       # (H, tq, tkv) f32

    l_ref[...] = alpha * l_ref[...] + jnp.sum(p, axis=-1, keepdims=True)
    acc_ref[...] = alpha * acc_ref[...] + jnp.einsum(
        "hqk,hkd->hqd", p.astype(vh.dtype), vh,
        preferred_element_type=jnp.float32)                      # (H, tq, D)
    m_ref[...] = m_new

    @pl.when(ki == pl.num_programs(2) - 1)
    def _fini():
        inv_l = pl.reciprocal(l_ref[...], approx=True)           # EUP, (H, tq, 1)
        out = acc_ref[...] * inv_l                               # (H, tq, D) f32
        # Single lane-dense (tq, C) store, C = H*D.
        o_ref[0] = out.transpose(1, 0, 2).reshape(tq, H * D).astype(o_ref.dtype)


def pallas_flash_attention(q, k, v, num_heads, scale, out_dtype=None):
    """q/k/v: (B, N, C) bf16, C = num_heads*head_dim -> (B, N, C) out_dtype."""
    B, N, C = q.shape
    D = C // num_heads
    out_dtype = out_dtype if out_dtype is not None else q.dtype

    tq = _divisor_tile(N, (256, 128)) or N
    tkv = _divisor_tile(N, (512, 256, 128)) or N
    # TODO(synk): for N that is not a multiple of 128 (e.g. 197 with a CLS
    # token) this falls back to a single monolithic tile; add padded tiles with
    # key masking to keep flash tiling in that case.

    kernel = functools.partial(_flash_attn_kernel, num_heads=num_heads,
                               head_dim=D, scale=scale)
    grid = (B, N // tq, N // tkv)

    return pl.pallas_call(
        kernel,
        out_shape=jax.ShapeDtypeStruct((B, N, C), out_dtype),
        grid=grid,
        in_specs=[
            pl.BlockSpec((1, tq, C), lambda b, qi, ki: (b, qi, 0)),   # q
            pl.BlockSpec((1, tkv, C), lambda b, qi, ki: (b, ki, 0)),  # k
            pl.BlockSpec((1, tkv, C), lambda b, qi, ki: (b, ki, 0)),  # v
        ],
        out_specs=pl.BlockSpec((1, tq, C), lambda b, qi, ki: (b, qi, 0)),
        scratch_shapes=[
            pltpu.VMEM((num_heads, tq, 1), jnp.float32),   # running max m
            pltpu.VMEM((num_heads, tq, 1), jnp.float32),   # running sum l
            pltpu.VMEM((num_heads, tq, D), jnp.float32),   # output accumulator
        ],
        compiler_params=pltpu.CompilerParams(
            dimension_semantics=("parallel", "parallel", "arbitrary"),
            vmem_limit_bytes=40 * 1024 * 1024,
        ),
    )(q, k, v)


# ---------------------------------------------------------------------------
# Forward wrapper (Attention.forward equivalent; H, W unused by the reference)
# ---------------------------------------------------------------------------
def attention_forward(x, params, num_heads):
    B, N, C = x.shape
    head_dim = C // num_heads
    scale = head_dim ** (-0.5)
    in_dtype = x.dtype

    # bf16 on the hot path (native MXU dtype; reference uses fp16, which is
    # non-native on TPU); fp32 accumulation inside every kernel.
    xb = x.astype(jnp.bfloat16).reshape(B * N, C)
    w_qkv = params["w_qkv"].astype(jnp.bfloat16)
    w_proj = params["w_proj"].astype(jnp.bfloat16)

    # Three slab GEMMs straight from the packed qkv weight (qkv_bias=False):
    # avoids writing (B, N, 3C) to HBM and re-slicing it for attention.
    q = pallas_linear(xb, w_qkv[:, :C], out_dtype=jnp.bfloat16).reshape(B, N, C)
    k = pallas_linear(xb, w_qkv[:, C:2 * C], out_dtype=jnp.bfloat16).reshape(B, N, C)
    v = pallas_linear(xb, w_qkv[:, 2 * C:], out_dtype=jnp.bfloat16).reshape(B, N, C)

    o = pallas_flash_attention(q, k, v, num_heads, scale,
                               out_dtype=jnp.bfloat16)            # (B, N, C)

    # Output projection (nn.Linear default bias); cast back to input dtype.
    # TODO(synk): on v5e, fold this projection into the attention finalize
    # (per-q-tile o @ w_proj) to save one (B, N, C) HBM round trip.
    out = pallas_linear(o.reshape(B * N, C), w_proj, params["b_proj"],
                        out_dtype=in_dtype)
    return out.reshape(B, N, C)


def attention_reference(x, params, num_heads):
    """Pure-JAX fp32 reference of the module's forward (for tolerance check)."""
    B, N, C = x.shape
    D = C // num_heads
    scale = D ** (-0.5)
    qkv = x @ params["w_qkv"]
    q, k, v = jnp.split(qkv, 3, axis=-1)

    def heads(t):
        return t.reshape(B, N, num_heads, D).transpose(0, 2, 1, 3)

    q, k, v = heads(q), heads(k), heads(v)
    s = jnp.einsum("bhqd,bhkd->bhqk", q, k) * scale
    p = jax.nn.softmax(s, axis=-1)
    o = jnp.einsum("bhqk,bhkd->bhqd", p, v)
    o = o.transpose(0, 2, 1, 3).reshape(B, N, C)
    return o @ params["w_proj"] + params["b_proj"]


def init_params(key, dim, num_heads):
    k1, k2, k3 = jax.random.split(key, 3)
    # Weights stored already transposed: (in_features, out_features), fp32
    # (mirrors the torch module's fp32 parameters; cast to bf16 at call time).
    w_qkv = jax.random.normal(k1, (dim, dim * 3), dtype=jnp.float32) * 0.02
    w_proj = jax.random.normal(k2, (dim, dim), dtype=jnp.float32) * 0.02
    b_proj = jax.random.normal(k3, (1, dim), dtype=jnp.float32) * 0.02
    # TODO(synk): rel_pos_h / rel_pos_w (COMPAT path) are parameters only; the
    # reference forward never uses them, so they are omitted here.
    return {"w_qkv": w_qkv, "w_proj": w_proj, "b_proj": b_proj}


if __name__ == "__main__":
    B, Hs, Ws = 2, 4, 4
    N = Hs * Ws           # 16 tokens
    dim = 64
    num_heads = 4         # head_dim = 16

    key = jax.random.PRNGKey(0)
    kx, kp = jax.random.split(key)
    x = jax.random.normal(kx, (B, N, dim), dtype=jnp.float32)
    params = init_params(kp, dim, num_heads)

    out = attention_forward(x, params, num_heads)
    out = jax.block_until_ready(out)
    assert out.shape == (B, N, dim) and out.dtype == jnp.float32

    ref = attention_reference(x, params, num_heads)
    err = float(jnp.max(jnp.abs(out - ref)))
    assert err < 3e-2, f"max abs error too large: {err}"
    print("KERNEL_OK")
</pallas_src>

<mosaic_0001>
module attributes {stable_mosaic.version = 11 : i64} {
  func.func @_linear_kernel(%arg0: i32, %arg1: i32, %arg2: i32, %arg3: memref<32x64xbf16, #tpu.memory_space<vmem>>, %arg4: memref<64x64xbf16, #tpu.memory_space<vmem>>, %arg5: memref<32x64xbf16, #tpu.memory_space<vmem>>, %arg6: memref<32x64xf32, #tpu.memory_space<vmem>>) attributes {dimension_semantics = [#tpu.dimension_semantics<parallel>, #tpu.dimension_semantics<parallel>, #tpu.dimension_semantics<arbitrary>], iteration_bounds = array<i64: 1, 1, 1>, scalar_prefetch = 0 : i64, scratch_operands = 1 : i64, tpu.core_type = #tpu.core_type<tc>, window_params = [{transform_indices = @transform_0, window_bounds = array<i64: 32, 64>}, {transform_indices = @transform_1, window_bounds = array<i64: 64, 64>}, {transform_indices = @transform_2, window_bounds = array<i64: 32, 64>}]} {
    %c0_i32 = arith.constant 0 : i32
    %0 = arith.cmpi eq, %arg2, %c0_i32 : i32
    %1 = arith.extui %0 : i1 to i32
    %c0_i32_0 = arith.constant 0 : i32
    %2 = arith.cmpi ne, %1, %c0_i32_0 : i32
    scf.if %2 {
      %cst_10 = arith.constant 0.000000e+00 : f32
      %12 = vector.broadcast %cst_10 : f32 to vector<32x64xf32>
      %c0_11 = arith.constant 0 : index
      %c0_12 = arith.constant 0 : index
      %13 = vector.load %arg6[%c0_11, %c0_12] : memref<32x64xf32, #tpu.memory_space<vmem>>, vector<32x64xf32>
      tpu.vector_store %arg6[%c0_11, %c0_12], %12 {strides = array<i32>} : memref<32x64xf32, #tpu.memory_space<vmem>>, vector<32x64xf32>,
    } else {
    }
    %c0 = arith.constant 0 : index
    %c0_1 = arith.constant 0 : index
    %3 = vector.load %arg6[%c0, %c0_1] : memref<32x64xf32, #tpu.memory_space<vmem>>, vector<32x64xf32>
    %c0_2 = arith.constant 0 : index
    %c0_3 = arith.constant 0 : index
    %4 = vector.load %arg3[%c0_2, %c0_3] : memref<32x64xbf16, #tpu.memory_space<vmem>>, vector<32x64xbf16>
    %c0_4 = arith.constant 0 : index
    %c0_5 = arith.constant 0 : index
    %5 = vector.load %arg4[%c0_4, %c0_5] : memref<64x64xbf16, #tpu.memory_space<vmem>>, vector<64x64xbf16>
    %cst = arith.constant dense<0.000000e+00> : vector<32x64xf32>
    %6 = tpu.matmul %4, %5, %cst {dimension_numbers = #tpu.dot_dimension_numbers<[1], [0], [0], [1], [0, 0, 1, 1], [], []>} : vector<32x64xbf16>, vector<64x64xbf16>, vector<32x64xf32> -> vector<32x64xf32>
    %7 = arith.addf %3, %6 : vector<32x64xf32>
    %c0_6 = arith.constant 0 : index
    %c0_7 = arith.constant 0 : index
    %8 = vector.load %arg6[%c0_6, %c0_7] : memref<32x64xf32, #tpu.memory_space<vmem>>, vector<32x64xf32>
    tpu.vector_store %arg6[%c0_6, %c0_7], %7 {strides = array<i32>} : memref<32x64xf32, #tpu.memory_space<vmem>>, vector<32x64xf32>,
    %c0_i32_8 = arith.constant 0 : i32
    %9 = arith.cmpi eq, %arg2, %c0_i32_8 : i32
    %10 = arith.extui %9 : i1 to i32
    %c0_i32_9 = arith.constant 0 : i32
    %11 = arith.cmpi ne, %10, %c0_i32_9 : i32
    scf.if %11 {
      %c0_10 = arith.constant 0 : index
      %c0_11 = arith.constant 0 : index
      %12 = vector.load %arg6[%c0_10, %c0_11] : memref<32x64xf32, #tpu.memory_space<vmem>>, vector<32x64xf32>
      %13 = arith.truncf %12 : vector<32x64xf32> to vector<32x64xbf16>
      %c0_12 = arith.constant 0 : index
      %c0_13 = arith.constant 0 : index
      %14 = vector.load %arg5[%c0_12, %c0_13] : memref<32x64xbf16, #tpu.memory_space<vmem>>, vector<32x64xbf16>
      tpu.vector_store %arg5[%c0_12, %c0_13], %13 {strides = array<i32>} : memref<32x64xbf16, #tpu.memory_space<vmem>>, vector<32x64xbf16>,
    } else {
    }
    return
  }
  func.func @transform_0(%arg0: i32, %arg1: i32, %arg2: i32) -> (i32, i32) {
    %c0_i32 = arith.constant 0 : i32
    return %arg0, %arg2 : i32, i32
  }
  func.func @transform_1(%arg0: i32, %arg1: i32, %arg2: i32) -> (i32, i32) {
    %c0_i32 = arith.constant 0 : i32
    return %arg2, %arg1 : i32, i32
  }
  func.func @transform_2(%arg0: i32, %arg1: i32, %arg2: i32) -> (i32, i32) {
    %c0_i32 = arith.constant 0 : i32
    return %arg0, %arg1 : i32, i32
  }
}

</mosaic_0001>

<bundles_post_ra>
// kernel: tpu_custom_call.1
= control target key start
LH: loop header
LB: loop body
LE: loop exit
PB: predicated region body
PF: predicated region fallthrough
CT: control target
= control target key end

     0   :  { %7 = vsyncpa [#allocation4], 0  ;;  %s347_s0 = inlined_call_operand.hbm [shape: bf16[32,64], index: 0, kind: input, shape index: {}]   ;;  %s348_s1 = inlined_call_operand.hbm [shape: bf16[64,64], index: 1, kind: input, shape index: {}]   ;;  %s349_s2 = inlined_call_operand.hbm [shape: bf16[32,64], index: 2, kind: output, shape index: {}]  }
   0x1   :  { %8 = vsyncpa [#allocation7], 0 }
   0x2   :  { %9 = vsyncpa [#allocation5], 0  ;;  %s14_s11 = sshll.u32 %s347_s0, 4  ;;  %s294_s12 = smov [#allocation3]   ;;  %s15_s11 = int_to_ptr.hbm [resolvable:$true] %s14_s11 }
   0x3   :  { %s16_s13 = sshll.u32 %s294_s12, 4  ;;  %s27_s16 = sshll.u32 %s348_s1, 4  ;;  %s17_s13 = int_to_ptr.vmem [resolvable:$true] %s16_s13  ;;  %s28_s16 = int_to_ptr.hbm [resolvable:$true] %s27_s16 }
   0x4   :  { %s295_s17 = smov 64   ;;  %s296_s18 = smov 4  }
   0x5   :  { %22 = dma.hbm_to_vmem [thread:$0]  %s15_s11, 256, %s17_s13, [#allocation4], %s295_s17, %s295_s17, %s296_s18  }
   0x6   :  { %s297_s19 = smov [#allocation6]  }
   0x7   :  { %s29_s20 = sshll.u32 %s297_s19, 4  ;;  %s30_s20 = int_to_ptr.vmem [resolvable:$true] %s29_s20 }
   0x8   :  { %35 = dma.hbm_to_vmem [thread:$0]  %s28_s16, 512, %s30_s20, [#allocation7], %s295_s17, %s295_s17, %s296_s18  }
   0x9   :  { %288 = dma.done.wait [#allocation4], 256  }
   0xa   :  { %289 = vsyncadd [#allocation4], 4294967040 }
   0xb   :  { %290 = dma.done.wait [#allocation7], 512  }
   0xc   :  { %291 = vsyncadd [#allocation7], 4294966784  ;;  %vm49_vm0 = vcmask 523264   ;;  %v298_v0 = vmov 0.0   ;;  %v205_v1 = vld [vmem:[#allocation6 + $0x18] sm:$0xff]  ;;  %v204_v2 = vld [vmem:[#allocation6 + $0x10] sm:$0xff] }
   0xd   :  { %50 = vst.msk [vmem:[#allocation2] sm:$0xff] %vm49_vm0, %v298_v0  ;;  %115 = vmatpush.bf16.msra.mxu0 %v205_v1  ;;  %206 = vmatpush.bf16.msra.mxu1 %v205_v1  ;;  %v203_v3 = vld [vmem:[#allocation6 + $0x8] sm:$0xff]  ;;  %v202_v4 = vld [vmem:[#allocation6] sm:$0xff]  ;;  %v200_v5 = vld [vmem:[#allocation3] sm:$0xff]  ;;  %vm149_vm1 = vcmask 519168   ;;  %s299_s0 = smov [#allocation8]  }
   0xe   :  { %51 = vst.msk [vmem:[#allocation2 + $0x8] sm:$0xff] %vm49_vm0, %v298_v0  ;;  %v201_v6 = vld [vmem:[#allocation3 + $0x8] sm:$0xff]  ;;  %s158_s1 = sshll.u32 %s299_s0, 4  ;;  %s160_s23 = sshll.u32 %s349_s2, 4  ;;  %s159_s1 = int_to_ptr.vmem [resolvable:$true] %s158_s1  ;;  %s161_s23 = int_to_ptr.hbm [resolvable:$true] %s160_s23 }
   0xf   :  { %52 = vst.msk [vmem:[#allocation2 + $0x10] sm:$0xff] %vm49_vm0, %v298_v0 }
  0x10   :  { %53 = vst.msk [vmem:[#allocation2 + $0x18] sm:$0xff] %vm49_vm0, %v298_v0 }
  0x11   :  { %116 = vmatpush.bf16.msra.mxu0 %v204_v2  ;;  %207 = vmatpush.bf16.msra.mxu1 %v204_v2 }
  0x14   :  { %v54_v7 = vld [vmem:[#allocation2] sm:$0xff] }
  0x15   :  { %117 = vmatpush.bf16.msra.mxu0 %v203_v3  ;;  %208 = vmatpush.bf16.msra.mxu1 %v203_v3  ;;  %v55_v13 = vld [vmem:[#allocation2 + $0x8] sm:$0xff] }
  0x16   :  { %v56_v8 = vld [vmem:[#allocation2 + $0x10] sm:$0xff] }
  0x17   :  { %v57_v14 = vld [vmem:[#allocation2 + $0x18] sm:$0xff] }
  0x19   :  { %118 = vmatpush.bf16.msra.mxu0 %v202_v4  ;;  %209 = vmatpush.bf16.msra.mxu1 %v202_v4 }
  0x1c   :  { %198 = vmatmul.msk.bf16.vlgmr.msra.gmra.mxu0 %vm49_vm0, %v200_v5  ;;  %199 = vmatmul.msk.bf16.vlgmr.msra.gmra.mxu1 %vm49_vm0, %v201_v6 }
  0x99   :  { %v120_v9 = vpop.f32.mrf.mxu0  ;;  %v125_v10 = vpop.f32.mrf.mxu1 }
  0x9a   :  { %v130_v11 = vadd.f32 %v120_v9, %v54_v7  ;;  %v132_v12 = vadd.f32 %v125_v10, %v56_v8 }
  0x9c   :  { %134 = vst.msk [vmem:[#allocation2] sm:$0xff] %vm49_vm0, %v130_v11 }
  0x9d   :  { %136 = vst.msk [vmem:[#allocation2 + $0x10] sm:$0xff] %vm49_vm0, %v132_v12 }
  0xa1   :  { %v122_v15 = vpop.f32.mrf.mxu0  ;;  %v127_v16 = vpop.f32.mrf.mxu1 }
  0xa2   :  { %v131_v17 = vadd.f32 %v122_v15, %v55_v13  ;;  %v133_v18 = vadd.f32 %v127_v16, %v57_v14 }
  0xa3   :  { %v141_v19 = vld [vmem:[#allocation2] sm:$0xff] }
  0xa4   :  { %135 = vst.msk [vmem:[#allocation2 + $0x8] sm:$0xff] %vm49_vm0, %v131_v17  ;;  %v143_v20 = vld [vmem:[#allocation2 + $0x10] sm:$0xff]  ;;  %v145_v21 = vpack.c.bf16 %v141_v19, %v141_v19 }
  0xa5   :  { %137 = vst.msk [vmem:[#allocation2 + $0x18] sm:$0xff] %vm49_vm0, %v133_v18  ;;  %v147_v22 = vpack.c.bf16 %v143_v20, %v143_v20 }
  0xa6   :  { %150 = vst.msk [vmem:[#allocation8] sm:$0xf] %vm149_vm1, %v145_v21 }
  0xa7   :  { %152 = vst.msk [vmem:[#allocation8 + $0x8] sm:$0xf] %vm149_vm1, %v147_v22 }
  0xab   :  { %v142_v23 = vld [vmem:[#allocation2 + $0x8] sm:$0xff] }
  0xac   :  { %v144_v24 = vld [vmem:[#allocation2 + $0x18] sm:$0xff]  ;;  %v146_v25 = vpack.c.bf16 %v142_v23, %v142_v23 }
  0xad   :  { %v148_v26 = vpack.c.bf16 %v144_v24, %v144_v24 }
  0xae   :  { %151 = vst.msk [vmem:[#allocation8 + $0x4] sm:$0xf] %vm149_vm1, %v146_v25 }
  0xaf   :  { %153 = vst.msk [vmem:[#allocation8 + $0xc] sm:$0xf] %vm149_vm1, %v148_v26 }
  0xb0   :  { %166 = dma.vmem_to_hbm [thread:$0]  %s159_s1, 256, %s161_s23, [#allocation5], %s295_s17, %s295_s17, %s296_s18  }
  0xb1   :  { %292 = dma.done.wait [#allocation5], 256  }
  0xb2   :  { %293 = vsyncadd [#allocation5], 4294967040 }
  0xb3   :  { %171 = vsyncpa [#allocation4], 1 }
  0xb4   :  { %172 = vsyncpa [#allocation7], 1 }
  0xb5   :  { %173 = vsyncpa [#allocation5], 1 }

</bundles_post_ra>
